<compile_context>
chip_gen: v7x
topology: tpu7x:2x2x1
jax: 0.10.0
libtpu: 0.0.40
codegen_flags: <defaults>
</compile_context>

<pallas_src>
import numpy as np

import jax
import jax.numpy as jnp
from jax import lax
from jax.experimental import pallas as pl
from jax.experimental.pallas import tpu as pltpu


def _round_up(x: int, m: int) -> int:
    return (x + m - 1) // m * m


# ---------------------------------------------------------------------------
# Pass 1: row-wise L2 normalization (each row normalized exactly once).
# ---------------------------------------------------------------------------
def _make_normalize_kernel(out_dtype):
    def kernel(x_ref, o_ref):
        x = x_ref[...]  # (rn, l_pad) f32
        # rsqrt on the (otherwise idle) EUP slot; eps keeps all-zero rows
        # (including zero-padded rows) finite -> they normalize to exactly 0.
        inv = lax.rsqrt(jnp.sum(x * x, axis=-1, keepdims=True) + 1e-12)
        o_ref[...] = (x * inv).astype(out_dtype)

    return kernel


def _pick_norm_tile(n_pad: int, l_pad: int, out_bytes: int) -> int:
    # Pass 1 is purely HBM-bound: use as big a row tile as a ~24 MiB budget
    # allows (double-buffered f32 input + out_dtype output).
    budget = 24 * 1024 * 1024
    per_row = l_pad * (4 + out_bytes) * 2
    for cand in (n_pad, 1024, 512, 256, 128, 64, 32, 16, 8):
        if cand <= n_pad and n_pad % cand == 0 and cand * per_row <= budget:
            return cand
    return 8


def _normalize_rows(tok_p, rn, out_dtype):
    n_pad, l_pad = tok_p.shape
    return pl.pallas_call(
        _make_normalize_kernel(out_dtype),
        out_shape=jax.ShapeDtypeStruct((n_pad, l_pad), out_dtype),
        grid=(n_pad // rn,),
        in_specs=[pl.BlockSpec((rn, l_pad), lambda i: (i, 0))],
        out_specs=pl.BlockSpec((rn, l_pad), lambda i: (i, 0)),
        compiler_params=pltpu.CompilerParams(
            dimension_semantics=("parallel",),
            vmem_limit_bytes=48 * 1024 * 1024),
    )(tok_p)


# ---------------------------------------------------------------------------
# Pass 2 tile selection: square T x T pair tiles from a VMEM budget that also
# fits v7x (64 MiB physical VMEM).
# ---------------------------------------------------------------------------
def _pick_pair_tile(n: int, lk: int, mm_bytes: int, max_pair_tile) -> int:
    budget = 40 * 1024 * 1024
    picked = 128
    for cand in (1024, 512, 256, 128):
        # double-buffered row+col token tiles + (T,T) f32 sim scratch
        if 4 * cand * lk * mm_bytes + 4 * cand * cand <= budget:
            picked = cand
            break
    if max_pair_tile is not None:
        picked = min(picked, max(128, (int(max_pair_tile) // 128) * 128))
    n8 = _round_up(n, 8)
    if n8 <= picked:
        if n > 512:
            # Split into two row tiles (multiple of 128 so label-tile lane
            # constraints hold) so v7x's two TensorCores both get work.
            return _round_up(-(-n // 2), 128)
        return n8
    return picked


# ---------------------------------------------------------------------------
# Pass 2: triangular-tiled similarity + hinge + reduction.
# ---------------------------------------------------------------------------
def _make_pair_loss_kernel(n: int, t: int, alpha: float, needs_mask: bool):
    def kernel(i_tbl, j_tbl, row_ref, col_ref, lab_r_ref, lab_c_ref,
               out_ref, acc_ref):
        p = pl.program_id(0)                      # triangular tile-pair index
        k = pl.program_id(1)                      # feature (lane) block index
        k_last = pl.num_programs(1) - 1

        @pl.when(k == 0)
        def _():
            acc_ref[...] = jnp.zeros_like(acc_ref)

        # (T, LK) . (T, LK)^T on the MXU: contract the lane dim directly
        # (no explicit transpose), accumulate similarity in f32 across k.
        acc_ref[...] += lax.dot_general(
            row_ref[...], col_ref[...],
            dimension_numbers=(((1,), (1,)), ((), ())),
            preferred_element_type=jnp.float32)

        @pl.when(k == k_last)
        def _():
            sim = acc_ref[...]                                   # (T, T) f32
            same = lab_r_ref[...] == lab_c_ref[...]              # (T, T) bool
            loss = jnp.where(same,
                             jnp.maximum(sim - alpha, 0.0),
                             1.0 - sim)

            if needs_mask:  # compile-time: only emitted when N was padded.
                bi = i_tbl[p]
                bj = j_tbl[p]
                row_g = bi * t + lax.broadcasted_iota(jnp.int32, (t, t), 0)
                col_g = bj * t + lax.broadcasted_iota(jnp.int32, (t, t), 1)
                loss = jnp.where((row_g < n) & (col_g < n), loss, 0.0)

            # Off-diagonal tile pairs cover their symmetric counterpart too.
            weight = jnp.where(i_tbl[p] == j_tbl[p],
                               jnp.float32(1.0), jnp.float32(2.0))
            out_ref[0, 0] = jnp.sum(loss) * weight

    return kernel


def multiclass_contrast_loss(tokens: jax.Array,
                             labels: jax.Array,
                             alpha: float = 0.3,
                             matmul_dtype=jnp.bfloat16,
                             max_pair_tile=None,
                             max_k_block: int = 2048) -> jax.Array:
    """Pallas TPU MultiClass_ContrastLoss (distance='cosine_similarity').

    Default path: rows normalized once in f32, downcast to bf16 for the MXU
    similarity pass (f32 accumulation). matmul_dtype=jnp.float32 is the slow
    debug path.
    """
    assert tokens.ndim == 2
    assert tokens.shape[0] == labels.shape[0]
    n, l = tokens.shape
    mm_bytes = jnp.dtype(matmul_dtype).itemsize

    # Feature (lane) padding + K blocking: lane block <= max_k_block, always a
    # multiple of 128; zero-padding changes neither norms nor dot products.
    l128 = _round_up(max(l, 128), 128)
    lk = min(_round_up(int(max_k_block), 128), l128)
    l_pad = _round_up(l128, lk)
    k_blocks = l_pad // lk

    # Square pair tile and row padding.
    t = _pick_pair_tile(n, lk, mm_bytes, max_pair_tile)
    n_pad = _round_up(n, t)
    gt = n_pad // t

    tok_p = jnp.pad(tokens.astype(jnp.float32),
                    ((0, n_pad - n), (0, l_pad - l)))
    lab_p = jnp.pad(labels.astype(jnp.int32), (0, n_pad - n))

    # Pass 1: normalize once with its own (larger) row tile, downcast.
    rn = _pick_norm_tile(n_pad, l_pad, mm_bytes)
    tok_n = _normalize_rows(tok_p, rn, matmul_dtype)

    lab_col = lab_p.reshape(n_pad, 1)   # labels[:, None]
    lab_row = lab_p.reshape(1, n_pad)   # labels[None, :]

    # Triangular (j >= i) tile enumeration: scalar-prefetched index tables.
    ii, jj = np.triu_indices(gt)
    i_tbl = jnp.asarray(ii, dtype=jnp.int32)
    j_tbl = jnp.asarray(jj, dtype=jnp.int32)
    num_pairs = int(ii.shape[0])

    kernel = _make_pair_loss_kernel(n, t, float(alpha),
                                    needs_mask=(n_pad != n))

    partials = pl.pallas_call(
        kernel,
        out_shape=jax.ShapeDtypeStruct((num_pairs, 1), jnp.float32),
        grid_spec=pltpu.PrefetchScalarGridSpec(
            num_scalar_prefetch=2,
            grid=(num_pairs, k_blocks),
            in_specs=[
                # row tokens: (T, LK), gathered via the i table
                pl.BlockSpec((t, lk), lambda p, k, it, jt: (it[p], k)),
                # col tokens: (T, LK), gathered via the j table
                pl.BlockSpec((t, lk), lambda p, k, it, jt: (jt[p], k)),
                # row labels (T, 1)
                pl.BlockSpec((t, 1), lambda p, k, it, jt: (it[p], 0)),
                # col labels (1, T)
                pl.BlockSpec((1, t), lambda p, k, it, jt: (0, jt[p])),
            ],
            out_specs=pl.BlockSpec((1, 1), lambda p, k, it, jt: (p, 0),
                                   memory_space=pltpu.SMEM),
            scratch_shapes=[pltpu.VMEM((t, t), jnp.float32)],
        ),
        compiler_params=pltpu.CompilerParams(
            # p: independent tile pairs (shardable across v7x's 2 TCs);
            # k: carries the similarity accumulator -> sequential.
            dimension_semantics=("parallel", "arbitrary"),
            vmem_limit_bytes=48 * 1024 * 1024),
    )(i_tbl, j_tbl, tok_n, tok_n, lab_col, lab_row)

    # Mean over the true (un-padded) n x n pairs.
    return jnp.sum(partials) * (1.0 / (n * n))


# ---------------------------------------------------------------------------
# Pure-JAX reference (mirrors the PyTorch module).
# ---------------------------------------------------------------------------
def _reference(tokens, labels, alpha=0.3):
    x = tokens.astype(jnp.float32)
    xn = x / jnp.linalg.norm(x, axis=-1, keepdims=True)
    sim = xn @ xn.T
    diff = labels[:, None] - labels[None, :]
    loss = jnp.where(diff != 0, 1.0 - sim, jnp.maximum(sim - alpha, 0.0))
    return jnp.mean(loss)


if __name__ == "__main__":
    key = jax.random.PRNGKey(0)
    k1, k2, k3, k4, k5, k6 = jax.random.split(key, 6)

    # Small shapes consistent with the module: 8 tokens, hidden size 32.
    N, L = 8, 32
    tokens = jax.random.normal(k1, (N, L), dtype=jnp.float32)
    labels = jax.random.randint(k2, (N,), 0, 3, dtype=jnp.int32)
    ref = _reference(tokens, labels, alpha=0.3)

    # f32 debug path: matches the reference tightly.
    loss_f32 = jax.block_until_ready(
        multiclass_contrast_loss(tokens, labels, alpha=0.3,
                                 matmul_dtype=jnp.float32))
    assert jnp.allclose(loss_f32, ref, atol=1e-5, rtol=1e-5), (loss_f32, ref)

    # Default bf16-input / f32-accumulate MXU fast path: looser tolerance.
    loss_bf16 = jax.block_until_ready(
        multiclass_contrast_loss(tokens, labels, alpha=0.3))
    assert jnp.allclose(loss_bf16, ref, atol=2e-2, rtol=2e-2), (loss_bf16, ref)

    # Non-multiple shapes: exercises N/L padding + in-kernel validity mask.
    N2, L2 = 13, 50
    tokens2 = jax.random.normal(k3, (N2, L2), dtype=jnp.float32)
    labels2 = jax.random.randint(k4, (N2,), 0, 4, dtype=jnp.int32)
    ref2 = _reference(tokens2, labels2, alpha=0.3)
    loss2 = jax.block_until_ready(
        multiclass_contrast_loss(tokens2, labels2, alpha=0.3,
                                 matmul_dtype=jnp.float32))
    assert jnp.allclose(loss2, ref2, atol=1e-5, rtol=1e-5), (loss2, ref2)

    # Multi-tile triangular grid: off-diagonal 2x weighting, K blocking and
    # padded-row masking all active (forced small tiles).
    N3, L3 = 200, 200
    tokens3 = jax.random.normal(k5, (N3, L3), dtype=jnp.float32)
    labels3 = jax.random.randint(k6, (N3,), 0, 5, dtype=jnp.int32)
    ref3 = _reference(tokens3, labels3, alpha=0.3)
    loss3 = jax.block_until_ready(
        multiclass_contrast_loss(tokens3, labels3, alpha=0.3,
                                 matmul_dtype=jnp.float32,
                                 max_pair_tile=128, max_k_block=128))
    assert jnp.allclose(loss3, ref3, atol=1e-4, rtol=1e-4), (loss3, ref3)

    print("KERNEL_OK")
</pallas_src>

<mosaic_0001>
module attributes {stable_mosaic.version = 11 : i64} {
  func.func @kernel(%arg0: i32, %arg1: memref<8x128xf32, #tpu.memory_space<vmem>>, %arg2: memref<8x128xf32, #tpu.memory_space<vmem>>) attributes {dimension_semantics = [#tpu.dimension_semantics<parallel>], iteration_bounds = array<i64: 1>, scalar_prefetch = 0 : i64, scratch_operands = 0 : i64, tpu.core_type = #tpu.core_type<tc>, window_params = [{transform_indices = @transform_0, window_bounds = array<i64: 8, 128>}, {transform_indices = @transform_1, window_bounds = array<i64: 8, 128>}]} {
    %c0 = arith.constant 0 : index
    %c0_0 = arith.constant 0 : index
    %0 = vector.load %arg1[%c0, %c0_0] : memref<8x128xf32, #tpu.memory_space<vmem>>, vector<8x128xf32>
    %1 = arith.mulf %0, %0 : vector<8x128xf32>
    %cst = arith.constant dense<0.000000e+00> : vector<8xf32>
    %2 = vector.multi_reduction <add>, %1, %cst [1] : vector<8x128xf32> to vector<8xf32>
    %3 = vector.shape_cast %2 : vector<8xf32> to vector<8x1xf32>
    %cst_1 = arith.constant 9.99999996E-13 : f32
    %4 = vector.broadcast %cst_1 : f32 to vector<8x1xf32>
    %5 = arith.addf %3, %4 : vector<8x1xf32>
    %6 = math.rsqrt %5 : vector<8x1xf32>
    %7 = vector.broadcast %6 : vector<8x1xf32> to vector<8x128xf32>
    %8 = arith.mulf %0, %7 : vector<8x128xf32>
    %c0_2 = arith.constant 0 : index
    %c0_3 = arith.constant 0 : index
    %9 = vector.load %arg2[%c0_2, %c0_3] : memref<8x128xf32, #tpu.memory_space<vmem>>, vector<8x128xf32>
    tpu.vector_store %arg2[%c0_2, %c0_3], %8 {strides = array<i32>} : memref<8x128xf32, #tpu.memory_space<vmem>>, vector<8x128xf32>,
    return
  }
  func.func @transform_0(%arg0: i32) -> (i32, i32) {
    %c0_i32 = arith.constant 0 : i32
    %c0_i32_0 = arith.constant 0 : i32
    return %arg0, %c0_i32 : i32, i32
  }
  func.func @transform_1(%arg0: i32) -> (i32, i32) {
    %c0_i32 = arith.constant 0 : i32
    %c0_i32_0 = arith.constant 0 : i32
    return %arg0, %c0_i32 : i32, i32
  }
}

</mosaic_0001>

<bundles_post_ra>
// kernel: tpu_custom_call.1
= control target key start
LH: loop header
LB: loop body
LE: loop exit
PB: predicated region body
PF: predicated region fallthrough
CT: control target
= control target key end

     0   :  { %6 = vsyncpa [#allocation3], 0  ;;  %s132_s0 = inlined_call_operand.hbm [shape: f32[8,128], index: 0, kind: input, shape index: {}]   ;;  %s133_s1 = inlined_call_operand.hbm [shape: f32[8,128], index: 1, kind: output, shape index: {}]  }
   0x1   :  { %7 = vsyncpa [#allocation4], 0  ;;  %s96_s6 = smov [#allocation2]   ;;  %s48_s10 = scalar_lea.hbm %s132_s0, 128 }
   0x2   :  { %s14_s7 = sshll.u32 %s96_s6, 4  ;;  %p49_p0 = scmp.ne.s32.totalorder %s132_s0, %s48_s10  ;;  %s15_s7 = int_to_ptr.vmem [resolvable:$true] %s14_s7 }
   0x3   :  { %p52_p1 = scmp.lt.u32.totalorder %s48_s10, %s132_s0 }
   0x5   :  { %p54_p2 = pnand %p52_p1, %p49_p0 }
   0x7   :  { %57 = shalt.err (!%p54_p2)
}
   0x8   :  { %s58_s15 = scalar_lea.vmem %s15_s7, 128  ;;  %p63_p4 = scmp.lt.s32.totalorder %s15_s7, %s15_s7 }
   0x9   :  { %p59_p3 = scmp.ne.s32.totalorder %s15_s7, %s58_s15  ;;  %p64_p5 = scmp.lt.s32.totalorder %s58_s15, %s58_s15 }
   0xb   :  { %p65_p6 = por %p64_p5, %p63_p4 }
   0xd   :  { %p66_p7 = pnand %p65_p6, %p59_p3 }
   0xf   :  { %69 = shalt.err (!%p66_p7)
}
  0x10   :  { %17 = dma.hbm_to_vmem [thread:$0]  %s132_s0, 128, %s15_s7, [#allocation3]  }
  0x11   :  { %92 = dma.done.wait [#allocation3], 128  }
  0x12   :  { %93 = vsyncadd [#allocation3], 4294967168  ;;  %v21_v0 = vld [vmem:[#allocation2] sm:$0xff]  ;;  %s97_s18 = smov [#allocation5]  }
  0x13   :  { %v22_v1 = vmul.f32 %v21_v0, %v21_v0  ;;  %s35_s19 = sshll.u32 %s97_s18, 4  ;;  %s36_s19 = int_to_ptr.vmem [resolvable:$true] %s35_s19 }
  0x14   :  { %s70_s20 = scalar_lea.vmem %s36_s19, 128  ;;  %p75_p9 = scmp.lt.s32.totalorder %s36_s19, %s36_s19 }
  0x15   :  { %23 = vadd.xlane.f32.xlu0 %v22_v1  ;;  %p71_p8 = scmp.ne.s32.totalorder %s36_s19, %s70_s20  ;;  %p76_p10 = scmp.lt.s32.totalorder %s70_s20, %s70_s20 }
  0x17   :  { %p77_p11 = por %p76_p10, %p75_p9 }
  0x19   :  { %p78_p12 = pnand %p77_p11, %p71_p8 }
  0xa2   :  { %v24_v2 = vpop.xlane.xlu0 %23 }
  0xa3   :  { %v25_v3 = vadd.f32 1e-12, %v24_v2 }
  0xa5   :  { %46 = vrsqrt.f32 %v25_v3 }
  0xaf   :  { %v47_v4 = vpop.eup %46 }
  0xb0   :  { %v27_v5 = vmul.f32 %v47_v4, %v21_v0 }
  0xb2   :  { %28 = vst [vmem:[#allocation5] sm:$0xff] %v27_v5 }
  0xb3   :  { %81 = shalt.err (!%p78_p12)
}
  0xb4   :  { %s82_s22 = scalar_lea.hbm %s133_s1, 128 }
  0xb5   :  { %p83_p13 = scmp.ne.s32.totalorder %s133_s1, %s82_s22  ;;  %p86_p0 = scmp.lt.u32.totalorder %s82_s22, %s133_s1 }
  0xb7   :  { %p88_p1 = pnand %p86_p0, %p83_p13 }
  0xb9   :  { %91 = shalt.err (!%p88_p1)
}
  0xba   :  { %38 = dma.vmem_to_hbm [thread:$0]  %s36_s19, 128, %s133_s1, [#allocation4]  }
  0xbb   :  { %94 = dma.done.wait [#allocation4], 128  }
  0xbc   :  { %95 = vsyncadd [#allocation4], 4294967168 }
  0xbd   :  { %42 = vsyncpa [#allocation3], 1 }
  0xbe   :  { %43 = vsyncpa [#allocation4], 1 }

</bundles_post_ra>
